<compile_context>
chip_gen: v5e
topology: v5e:2x2
jax: 0.10.0
libtpu: 0.0.40
codegen_flags: <defaults>
</compile_context>

<pallas_src>
import jax
import jax.numpy as jnp
from jax.experimental import pallas as pl
from jax.experimental.pallas import tpu as pltpu

B = 2            # batch
XF = 1           # per-copy feature width (10 copies -> 10 = Linear in_features)
REPEAT = 10      # number of concatenated copies
K = XF * REPEAT  # 10, Linear in_features
N = 5            # Linear out_features


def folded_linear_kernel(x_ref, p_ref, o_ref):
    # x_ref: (B, XF)  == (2, 1)
    # p_ref: (2, N)   == (2, 5)   row 0 = folded+transposed weight, row 1 = bias
    # o_ref: (B, N)   == (2, 5)
    #
    # Because XF == 1, x @ wf is exactly a broadcasted elementwise multiply:
    # (B,1) * (1,N) -> (B,N). Pure VPU multiply-add; no concat, no MXU, no
    # transpose inside the kernel. Everything fits in a single (8,128) vreg.
    params = p_ref[...]              # (2, N), one vreg tile
    wf = params[0:1, :]              # (1, N) folded weight row
    bias = params[1:2, :]            # (1, N) bias row
    o_ref[...] = (x_ref[...] * wf + bias).astype(o_ref.dtype)


def fold_params(w, b):
    """Runs ONCE at parameter-init time, not in the per-call path.

    cat((x,)*REPEAT, dim=1) @ W.T == x @ W_folded.T with
    W_folded = W.reshape(N, REPEAT, XF).sum(axis=1)   -> (N, XF)
    We pre-transpose (-> (XF, N)) and pack with the bias into one (2, N)
    array so the kernel has a single parameter operand.
    """
    wf_t = w.reshape(N, REPEAT, XF).sum(axis=1).T     # (XF, N) == (1, 5)
    return jnp.concatenate([wf_t, b.reshape(1, N)], axis=0)  # (2, N)


@jax.jit
def model_forward(x, packed_params):
    return pl.pallas_call(
        folded_linear_kernel,
        out_shape=jax.ShapeDtypeStruct((B, N), jnp.float32),
        grid=(),  # microscopic problem: single program, all operands VMEM-resident
        in_specs=[
            pl.BlockSpec(memory_space=pltpu.MemorySpace.VMEM),
            pl.BlockSpec(memory_space=pltpu.MemorySpace.VMEM),
        ],
        out_specs=pl.BlockSpec(memory_space=pltpu.MemorySpace.VMEM),
    )(x, packed_params)


if __name__ == "__main__":
    key = jax.random.PRNGKey(0)
    kx, kw, kb = jax.random.split(key, 3)

    # Deterministic inputs / "parameters" (Linear(10, 5): weight (5,10), bias (5,))
    x = jax.random.normal(kx, (B, XF), dtype=jnp.float32)
    w = jax.random.normal(kw, (N, K), dtype=jnp.float32) * 0.1
    b = jax.random.normal(kb, (N,), dtype=jnp.float32) * 0.1

    # Parameter-init-time fold (not part of the per-forward cost).
    packed = jax.block_until_ready(fold_params(w, b))

    out = model_forward(x, packed)
    out = jax.block_until_ready(out)

    # Reference check against the ORIGINAL (unfolded) semantics:
    # cat((x,)*10, dim=1) @ W.T + b
    ref = jnp.concatenate([x] * REPEAT, axis=1) @ w.T + b
    assert out.shape == (B, N)
    assert jnp.allclose(out, ref, atol=1e-5, rtol=1e-5)

    print("KERNEL_OK")
</pallas_src>

<mosaic_0001>
module attributes {stable_mosaic.version = 11 : i64} {
  func.func @folded_linear_kernel(%arg0: memref<2x1xf32, #tpu.memory_space<vmem>>, %arg1: memref<2x5xf32, #tpu.memory_space<vmem>>, %arg2: memref<2x5xf32, #tpu.memory_space<vmem>>) attributes {dimension_semantics = [], scalar_prefetch = 0 : i64, scratch_operands = 0 : i64, tpu.core_type = #tpu.core_type<tc>} {
    %c0 = arith.constant 0 : index
    %c0_0 = arith.constant 0 : index
    %0 = vector.load %arg1[%c0, %c0_0] : memref<2x5xf32, #tpu.memory_space<vmem>>, vector<2x5xf32>
    %1 = vector.extract_strided_slice %0 {offsets = [0, 0], sizes = [1, 5], strides = [1, 1]} : vector<2x5xf32> to vector<1x5xf32>
    %2 = vector.extract_strided_slice %0 {offsets = [1, 0], sizes = [1, 5], strides = [1, 1]} : vector<2x5xf32> to vector<1x5xf32>
    %c0_1 = arith.constant 0 : index
    %c0_2 = arith.constant 0 : index
    %3 = vector.load %arg0[%c0_1, %c0_2] : memref<2x1xf32, #tpu.memory_space<vmem>>, vector<2x1xf32>
    %4 = vector.broadcast %3 : vector<2x1xf32> to vector<2x5xf32>
    %5 = vector.broadcast %1 : vector<1x5xf32> to vector<2x5xf32>
    %6 = arith.mulf %4, %5 : vector<2x5xf32>
    %7 = vector.broadcast %2 : vector<1x5xf32> to vector<2x5xf32>
    %8 = arith.addf %6, %7 : vector<2x5xf32>
    %c0_3 = arith.constant 0 : index
    %c0_4 = arith.constant 0 : index
    %9 = vector.load %arg2[%c0_3, %c0_4] : memref<2x5xf32, #tpu.memory_space<vmem>>, vector<2x5xf32>
    tpu.vector_store %arg2[%c0_3, %c0_4], %8 {strides = array<i32>} : memref<2x5xf32, #tpu.memory_space<vmem>>, vector<2x5xf32>,
    return
  }
}

</mosaic_0001>

<bundles_post_ra>
// kernel: model_forward.1
= control target key start
LH: loop header
LB: loop body
LE: loop exit
PB: predicated region body
PF: predicated region fallthrough
CT: control target
= control target key end

     0   :  { %s96_s0 = inlined_call_operand.vmem [shape: f32[2,1], index: 0, kind: input, shape index: {}]   ;;  %s97_s1 = inlined_call_operand.vmem [shape: f32[2,5], index: 1, kind: input, shape index: {}]   ;;  %s98_s2 = inlined_call_operand.hbm [shape: f32[2,5], index: 2, kind: output, shape index: {}]  }
   0x1   :  { %v13_v0 = vld [vmem:[%s96_s0] sm:$0x3] }
   0x2   :  { %7 = vsyncpa [#allocation3], 0  ;;  %v70_v1 = vmov 0   ;;  %v12_v2 = vld [vmem:[%s97_s1] sm:$0x3]  ;;  %s71_s13 = smov [#allocation2]  }
   0x3   :  { %43 = vset.pattern.permute.xlu0 %v70_v1  ;;  %v19_v3 = vperm.slane %v12_v2, 0  ;;  %v21_v4 = vperm.slane %v12_v2, 1  ;;  %s30_s14 = sshll.u32 %s71_s13, 4  ;;  %s32_s17 = sshll.u32 %s98_s2, 4  ;;  %vm23_vm0 = vcmask 33792   ;;  %s31_s14 = int_to_ptr.vmem [resolvable:$true] %s30_s14  ;;  %s33_s17 = int_to_ptr.hbm [resolvable:$true] %s32_s17 }
   0x4   :  { %16 = vperm.xlu0 %43, %v13_v0  }
  0x76   :  { %v17_v5 = vpop.permute.xlu0 %16 }
  0x77   :  { %v20_v6 = vmul.f32 %v19_v3, %v17_v5 }
  0x79   :  { %v22_v7 = vadd.f32 %v21_v4, %v20_v6 }
  0x7b   :  { %24 = vst.msk [vmem:[#allocation2] sm:$0x3] %vm23_vm0, %v22_v7 }
  0x7c   :  { %35 = dma.vmem_to_hbm [thread:$0]  %s31_s14, 32, %s33_s17, [#allocation3]  }
  0x7d   :  { %68 = dma.done.wait [#allocation3], 32  }
  0x7e   :  { %69 = vsyncadd [#allocation3], 4294967264 }
  0x7f   :  { %40 = vsyncpa [#allocation3], 1 }

</bundles_post_ra>
